<compile_context>
chip_gen: v7x
topology: tpu7x:2x2x1
jax: 0.10.0
libtpu: 0.0.40
codegen_flags: <defaults>
</compile_context>

<pallas_src>
import jax
import jax.numpy as jnp
from jax.experimental import pallas as pl
from jax.experimental.pallas import tpu as pltpu


def _round_up(n, m):
    return ((n + m - 1) // m) * m


def _associator_kernel(x_ref, w1_ref, b1_ref, w2_ref, b2_ref, w3_ref, b3_ref,
                       o_ref):
    x = x_ref[...]
    # fc1 + ReLU (f32 MXU accumulate, epilogue in f32)
    h = jnp.dot(x, w1_ref[...], preferred_element_type=jnp.float32) + b1_ref[...]
    h = jnp.maximum(h, 0.0)
    # fc2 + ReLU
    h = jnp.dot(h, w2_ref[...], preferred_element_type=jnp.float32) + b2_ref[...]
    h = jnp.maximum(h, 0.0)
    # fc3 (no activation)
    out = jnp.dot(h, w3_ref[...], preferred_element_type=jnp.float32) + b3_ref[...]
    o_ref[...] = out.astype(o_ref.dtype)


_MAX_TB = 2048  # rows per grid step; un-padded tiles keep this a few hundred KiB


def _pick_batch_tile(batch):
    """Batch tile: multiple of 8 (or full extent for tiny batches); >=2 grid
    steps whenever batch > 8 so v7x's two TensorCores both get work."""
    if batch <= 8:
        return batch                       # single full-extent block, grid=(1,)
    if batch <= 2 * _MAX_TB:
        return _round_up(-(-batch // 2), 8)  # ~half the batch, 8-aligned
    return _MAX_TB


@jax.jit
def associator_forward(x, params):
    """x: [batch, input_size + n_conditions*context_size] float32."""
    w1, b1, w2, b2, w3, b3 = params
    batch, in_f = x.shape
    hid_f = w1.shape[1]
    out_f = w3.shape[1]

    tb = _pick_batch_tile(batch)
    batch_p = _round_up(batch, tb)
    # Pad only along batch, only when needed, and at the true feature width.
    x_in = x if batch_p == batch else jnp.pad(x, ((0, batch_p - batch), (0, 0)))

    grid = (batch_p // tb,)

    out = pl.pallas_call(
        _associator_kernel,
        out_shape=jax.ShapeDtypeStruct((batch_p, out_f), jnp.float32),
        grid=grid,
        in_specs=[
            # x tile: streamed / double-buffered per grid step (true width)
            pl.BlockSpec((tb, in_f), lambda i: (i, 0)),
            # weights & biases: full-array blocks with constant index_map ->
            # VMEM-resident across every grid step (no re-DMA)
            pl.BlockSpec((in_f, hid_f), lambda i: (0, 0)),
            pl.BlockSpec((1, hid_f), lambda i: (0, 0)),
            pl.BlockSpec((hid_f, hid_f), lambda i: (0, 0)),
            pl.BlockSpec((1, hid_f), lambda i: (0, 0)),
            pl.BlockSpec((hid_f, out_f), lambda i: (0, 0)),
            pl.BlockSpec((1, out_f), lambda i: (0, 0)),
        ],
        out_specs=pl.BlockSpec((tb, out_f), lambda i: (i, 0)),
        compiler_params=pltpu.CompilerParams(
            dimension_semantics=("parallel",),  # shard batch across TCs on v7x
        ),
    )(x_in, w1, b1, w2, b2, w3, b3)

    return out if batch_p == batch else out[:batch]


def init_params(key, input_size, hidden_size, output_size,
                n_conditions=2, context_size=1):
    """Deterministic synthetic init (PyTorch-Linear-style uniform bounds)."""
    in_features = input_size + n_conditions * context_size
    ks = jax.random.split(key, 6)

    def linear(kw, kb, fan_in, fan_out):
        bound = 1.0 / jnp.sqrt(jnp.float32(fan_in))
        # store weight as [in, out] (transpose of PyTorch's [out, in])
        w = jax.random.uniform(kw, (fan_in, fan_out), jnp.float32, -bound, bound)
        b = jax.random.uniform(kb, (1, fan_out), jnp.float32, -bound, bound)
        return w, b

    w1, b1 = linear(ks[0], ks[1], in_features, hidden_size)
    w2, b2 = linear(ks[2], ks[3], hidden_size, hidden_size)
    w3, b3 = linear(ks[4], ks[5], hidden_size, output_size)
    return (w1, b1, w2, b2, w3, b3)


if __name__ == "__main__":
    # Small shapes consistent with the module's forward:
    #   input_size=16, n_conditions=2, context_size=1 -> in_features=18
    #   hidden_size=32, output_size=8, batch=2
    input_size, hidden_size, output_size = 16, 32, 8
    n_conditions, context_size = 2, 1
    batch = 2
    in_features = input_size + n_conditions * context_size

    key = jax.random.PRNGKey(0)
    kx, kp = jax.random.split(key)
    x = jax.random.normal(kx, (batch, in_features), jnp.float32)
    params = init_params(kp, input_size, hidden_size, output_size,
                         n_conditions, context_size)

    out = associator_forward(x, params)
    jax.block_until_ready(out)

    # Pure-JAX reference check
    w1, b1, w2, b2, w3, b3 = params
    ref = jnp.maximum(x @ w1 + b1, 0.0)
    ref = jnp.maximum(ref @ w2 + b2, 0.0)
    ref = ref @ w3 + b3
    assert out.shape == (batch, output_size)
    assert jnp.allclose(out, ref, atol=1e-5, rtol=1e-5)

    # A larger, non-divisible batch to exercise the multi-step grid + batch-pad
    # remainder path.
    xb = jax.random.normal(kx, (1029, in_features), jnp.float32)
    outb = associator_forward(xb, params)
    jax.block_until_ready(outb)
    refb = jnp.maximum(xb @ w1 + b1, 0.0)
    refb = jnp.maximum(refb @ w2 + b2, 0.0)
    refb = refb @ w3 + b3
    assert outb.shape == (1029, output_size)
    assert jnp.allclose(outb, refb, atol=1e-4, rtol=1e-5)

    print("KERNEL_OK")
</pallas_src>

<mosaic_0001>
module attributes {stable_mosaic.version = 11 : i64} {
  func.func @_associator_kernel(%arg0: i32, %arg1: memref<2x18xf32, #tpu.memory_space<vmem>>, %arg2: memref<18x32xf32, #tpu.memory_space<vmem>>, %arg3: memref<1x32xf32, #tpu.memory_space<vmem>>, %arg4: memref<32x32xf32, #tpu.memory_space<vmem>>, %arg5: memref<1x32xf32, #tpu.memory_space<vmem>>, %arg6: memref<32x8xf32, #tpu.memory_space<vmem>>, %arg7: memref<1x8xf32, #tpu.memory_space<vmem>>, %arg8: memref<2x8xf32, #tpu.memory_space<vmem>>) attributes {dimension_semantics = [#tpu.dimension_semantics<parallel>], iteration_bounds = array<i64: 1>, scalar_prefetch = 0 : i64, scratch_operands = 0 : i64, tpu.core_type = #tpu.core_type<tc>, window_params = [{transform_indices = @transform_0, window_bounds = array<i64: 2, 18>}, {pipeline_mode = #tpu.pipeline_mode<synchronous>, transform_indices = @transform_1, window_bounds = array<i64: 18, 32>}, {pipeline_mode = #tpu.pipeline_mode<synchronous>, transform_indices = @transform_2, window_bounds = array<i64: 1, 32>}, {pipeline_mode = #tpu.pipeline_mode<synchronous>, transform_indices = @transform_3, window_bounds = array<i64: 32, 32>}, {pipeline_mode = #tpu.pipeline_mode<synchronous>, transform_indices = @transform_4, window_bounds = array<i64: 1, 32>}, {pipeline_mode = #tpu.pipeline_mode<synchronous>, transform_indices = @transform_5, window_bounds = array<i64: 32, 8>}, {pipeline_mode = #tpu.pipeline_mode<synchronous>, transform_indices = @transform_6, window_bounds = array<i64: 1, 8>}, {transform_indices = @transform_7, window_bounds = array<i64: 2, 8>}]} {
    %c0 = arith.constant 0 : index
    %c0_0 = arith.constant 0 : index
    %0 = vector.load %arg1[%c0, %c0_0] : memref<2x18xf32, #tpu.memory_space<vmem>>, vector<2x18xf32>
    %c0_1 = arith.constant 0 : index
    %c0_2 = arith.constant 0 : index
    %1 = vector.load %arg2[%c0_1, %c0_2] : memref<18x32xf32, #tpu.memory_space<vmem>>, vector<18x32xf32>
    %cst = arith.constant dense<0.000000e+00> : vector<2x32xf32>
    %2 = tpu.matmul %0, %1, %cst {dimension_numbers = #tpu.dot_dimension_numbers<[1], [0], [0], [1], [0, 0, 1, 1], [], []>} : vector<2x18xf32>, vector<18x32xf32>, vector<2x32xf32> -> vector<2x32xf32>
    %c0_3 = arith.constant 0 : index
    %c0_4 = arith.constant 0 : index
    %3 = vector.load %arg3[%c0_3, %c0_4] : memref<1x32xf32, #tpu.memory_space<vmem>>, vector<1x32xf32>
    %4 = vector.broadcast %3 : vector<1x32xf32> to vector<2x32xf32>
    %5 = arith.addf %2, %4 : vector<2x32xf32>
    %cst_5 = arith.constant 0.000000e+00 : f32
    %6 = vector.broadcast %cst_5 : f32 to vector<2x32xf32>
    %7 = arith.maximumf %5, %6 : vector<2x32xf32>
    %c0_6 = arith.constant 0 : index
    %c0_7 = arith.constant 0 : index
    %8 = vector.load %arg4[%c0_6, %c0_7] : memref<32x32xf32, #tpu.memory_space<vmem>>, vector<32x32xf32>
    %cst_8 = arith.constant dense<0.000000e+00> : vector<2x32xf32>
    %9 = tpu.matmul %7, %8, %cst_8 {dimension_numbers = #tpu.dot_dimension_numbers<[1], [0], [0], [1], [0, 0, 1, 1], [], []>} : vector<2x32xf32>, vector<32x32xf32>, vector<2x32xf32> -> vector<2x32xf32>
    %c0_9 = arith.constant 0 : index
    %c0_10 = arith.constant 0 : index
    %10 = vector.load %arg5[%c0_9, %c0_10] : memref<1x32xf32, #tpu.memory_space<vmem>>, vector<1x32xf32>
    %11 = vector.broadcast %10 : vector<1x32xf32> to vector<2x32xf32>
    %12 = arith.addf %9, %11 : vector<2x32xf32>
    %cst_11 = arith.constant 0.000000e+00 : f32
    %13 = vector.broadcast %cst_11 : f32 to vector<2x32xf32>
    %14 = arith.maximumf %12, %13 : vector<2x32xf32>
    %c0_12 = arith.constant 0 : index
    %c0_13 = arith.constant 0 : index
    %15 = vector.load %arg6[%c0_12, %c0_13] : memref<32x8xf32, #tpu.memory_space<vmem>>, vector<32x8xf32>
    %cst_14 = arith.constant dense<0.000000e+00> : vector<2x8xf32>
    %16 = tpu.matmul %14, %15, %cst_14 {dimension_numbers = #tpu.dot_dimension_numbers<[1], [0], [0], [1], [0, 0, 1, 1], [], []>} : vector<2x32xf32>, vector<32x8xf32>, vector<2x8xf32> -> vector<2x8xf32>
    %c0_15 = arith.constant 0 : index
    %c0_16 = arith.constant 0 : index
    %17 = vector.load %arg7[%c0_15, %c0_16] : memref<1x8xf32, #tpu.memory_space<vmem>>, vector<1x8xf32>
    %18 = vector.broadcast %17 : vector<1x8xf32> to vector<2x8xf32>
    %19 = arith.addf %16, %18 : vector<2x8xf32>
    %c0_17 = arith.constant 0 : index
    %c0_18 = arith.constant 0 : index
    %20 = vector.load %arg8[%c0_17, %c0_18] : memref<2x8xf32, #tpu.memory_space<vmem>>, vector<2x8xf32>
    tpu.vector_store %arg8[%c0_17, %c0_18], %19 {strides = array<i32>} : memref<2x8xf32, #tpu.memory_space<vmem>>, vector<2x8xf32>,
    return
  }
  func.func @transform_0(%arg0: i32) -> (i32, i32) {
    %c0_i32 = arith.constant 0 : i32
    %c0_i32_0 = arith.constant 0 : i32
    return %arg0, %c0_i32 : i32, i32
  }
  func.func @transform_1(%arg0: i32) -> (i32, i32) {
    %c0_i32 = arith.constant 0 : i32
    %c0_i32_0 = arith.constant 0 : i32
    %c0_i32_1 = arith.constant 0 : i32
    return %c0_i32, %c0_i32_0 : i32, i32
  }
  func.func @transform_2(%arg0: i32) -> (i32, i32) {
    %c0_i32 = arith.constant 0 : i32
    %c0_i32_0 = arith.constant 0 : i32
    %c0_i32_1 = arith.constant 0 : i32
    return %c0_i32, %c0_i32_0 : i32, i32
  }
  func.func @transform_3(%arg0: i32) -> (i32, i32) {
    %c0_i32 = arith.constant 0 : i32
    %c0_i32_0 = arith.constant 0 : i32
    %c0_i32_1 = arith.constant 0 : i32
    return %c0_i32, %c0_i32_0 : i32, i32
  }
  func.func @transform_4(%arg0: i32) -> (i32, i32) {
    %c0_i32 = arith.constant 0 : i32
    %c0_i32_0 = arith.constant 0 : i32
    %c0_i32_1 = arith.constant 0 : i32
    return %c0_i32, %c0_i32_0 : i32, i32
  }
  func.func @transform_5(%arg0: i32) -> (i32, i32) {
    %c0_i32 = arith.constant 0 : i32
    %c0_i32_0 = arith.constant 0 : i32
    %c0_i32_1 = arith.constant 0 : i32
    return %c0_i32, %c0_i32_0 : i32, i32
  }
  func.func @transform_6(%arg0: i32) -> (i32, i32) {
    %c0_i32 = arith.constant 0 : i32
    %c0_i32_0 = arith.constant 0 : i32
    %c0_i32_1 = arith.constant 0 : i32
    return %c0_i32, %c0_i32_0 : i32, i32
  }
  func.func @transform_7(%arg0: i32) -> (i32, i32) {
    %c0_i32 = arith.constant 0 : i32
    %c0_i32_0 = arith.constant 0 : i32
    return %arg0, %c0_i32 : i32, i32
  }
}

</mosaic_0001>

<bundles_post_ra>
// kernel: associator_forward.1
= control target key start
LH: loop header
LB: loop body
LE: loop exit
PB: predicated region body
PF: predicated region fallthrough
CT: control target
= control target key end

     0   :  { %12 = vsyncpa [#allocation3], 0  ;;  %s550_s0 = inlined_call_operand.vmem [shape: f32[2,18], index: 0, kind: input, shape index: {}]   ;;  %s551_s1 = inlined_call_operand.hbm [shape: f32[18,32], index: 1, kind: input, shape index: {}]   ;;  %s552_s2 = inlined_call_operand.vmem [shape: f32[1,32], index: 2, kind: input, shape index: {}]   ;;  %s553_s3 = inlined_call_operand.vmem [shape: f32[32,32], index: 3, kind: input, shape index: {}]   ;;  %s554_s4 = inlined_call_operand.vmem [shape: f32[1,32], index: 4, kind: input, shape index: {}]   ;;  %s555_s5 = inlined_call_operand.vmem [shape: f32[32,8], index: 5, kind: input, shape index: {}]   ;;  %s556_s6 = inlined_call_operand.vmem [shape: f32[1,8], index: 6, kind: input, shape index: {}]   ;;  %s557_s7 = inlined_call_operand.hbm [shape: f32[2,8], index: 7, kind: output, shape index: {}]  }
   0x1   :  { %13 = vsyncpa [#allocation4], 0  ;;  %s440_s24 = smov [#allocation2]   ;;  %s392_s28 = scalar_lea.hbm %s551_s1, 384 }
   0x2   :  { %s21_s25 = sshll.u32 %s440_s24, 4  ;;  %p393_p0 = scmp.ne.s32.totalorder %s551_s1, %s392_s28  ;;  %s22_s25 = int_to_ptr.vmem [resolvable:$true] %s21_s25 }
   0x3   :  { %p396_p1 = scmp.lt.u32.totalorder %s392_s28, %s551_s1 }
   0x5   :  { %p398_p2 = pnand %p396_p1, %p393_p0 }
   0x7   :  { %401 = shalt.err (!%p398_p2)
}
   0x8   :  { %s402_s10 = scalar_lea.vmem %s22_s25, 384  ;;  %p407_p4 = scmp.lt.s32.totalorder %s22_s25, %s22_s25 }
   0x9   :  { %p403_p3 = scmp.ne.s32.totalorder %s22_s25, %s402_s10  ;;  %p408_p5 = scmp.lt.s32.totalorder %s402_s10, %s402_s10 }
   0xb   :  { %p409_p6 = por %p408_p5, %p407_p4 }
   0xd   :  { %p410_p7 = pnand %p409_p6, %p403_p3 }
   0xf   :  { %413 = shalt.err (!%p410_p7)
}
  0x10   :  { %s441_s11 = smov 128   ;;  %s442_s12 = smov 8  }
  0x11   :  { %27 = dma.hbm_to_vmem [thread:$0]  %s551_s1, 384, %s22_s25, [#allocation3], %s441_s11, %s441_s11, %s442_s12  }
  0x12   :  { %436 = dma.done.wait [#allocation3], 384  }
  0x13   :  { %437 = vsyncadd [#allocation3], 4294966912  ;;  %v443_v0 = vmov 0.0|0.0   ;;  %vm444_vm0 = vmmov 0   ;;  %v445_v1 = vmov 0.0   ;;  %v42_v2 = vld [vmem:[#allocation2] sm:$0xff] }
  0x14   :  { %370 = vmatprep.subr.bf16.mxu0 %v443_v0  ;;  %345 = vmatprep.mubr.msk.f32.mxu0 %vm444_vm0, %v445_v1  ;;  %v43_v3 = vld [vmem:[#allocation2 + $0x8] sm:$0xff]  ;;  %v131_v5 = vld [vmem:[%s553_s3] sm:$0xff]  ;;  %v44_v8 = vld [vmem:[#allocation2 + $0x10] sm:$0x3]  ;;  %vm56_vm1 = vcmask 1041408   ;;  %vm52_vm2 = vcmask 146432  }
  0x15   :  { %373 = vmatprep.subr.bf16.mxu1 %v443_v0  ;;  %356 = vmatprep.mubr.msk.f32.mxu1 %vm444_vm0, %v445_v1  ;;  %v371_v4 = vpack.c.bf16 %v43_v3, %v42_v2  ;;  %v132_v6 = vld [vmem:[%s553_s3 + $0x8] sm:$0xff]  ;;  %v41_v9 = vld [vmem:[%s550_s0] sm:$0x3]  ;;  %v133_v10 = vld [vmem:[%s553_s3 + $0x10] sm:$0xff]  ;;  %vm142_vm3 = vcmask 261120   ;;  %s446_s12 = smov [#allocation5]  }
  0x16   :  { %v374_v7 = vpack.c.bf16 %v132_v6, %v131_v5  ;;  %v134_v11 = vld [vmem:[%s553_s3 + $0x18] sm:$0xff]  ;;  %v217_v13 = vld [vmem:[%s555_s5] sm:$0xff]  ;;  %v218_v14 = vld [vmem:[%s555_s5 + $0x8] sm:$0xff]  ;;  %s309_s13 = sshll.u32 %s446_s12, 4  ;;  %vm301_vm4 = vcmask 58368   ;;  %s310_s13 = int_to_ptr.vmem [resolvable:$true] %s309_s13 }
  0x17   :  { %372 = vmatpush3.bf16.msra.mxu0 %v371_v4  ;;  %v377_v12 = vpack.c.bf16 %v134_v11, %v133_v10  ;;  %v380_v15 = vpack.c.bf16 %v218_v14, %v217_v13  ;;  %v318_v16 = vld [vmem:[%s552_s2] ss:$0 sm:$0xff]  ;;  %v219_v21 = vld [vmem:[%s555_s5 + $0x10] sm:$0xff]  ;;  %v220_v22 = vld [vmem:[%s555_s5 + $0x18] sm:$0xff]  ;;  %s414_s5 = scalar_lea.vmem %s310_s13, 32  ;;  %p419_p9 = scmp.lt.s32.totalorder %s310_s13, %s310_s13 }
  0x18   :  { %343 = vmatprep.subr.mxu0 %v445_v1  ;;  %375 = vmatpush3.bf16.msra.mxu1 %v374_v7  ;;  %v383_v23 = vpack.c.bf16 %v220_v22, %v219_v21  ;;  %v321_v24 = vld [vmem:[%s554_s4] ss:$0 sm:$0xff]  ;;  %p415_p8 = scmp.ne.s32.totalorder %s310_s13, %s414_s5  ;;  %p420_p10 = scmp.lt.s32.totalorder %s414_s5, %s414_s5 }
  0x19   :  { %376 = vmatprep.subr.bf16.mxu1 %v443_v0  ;;  %v323_v29 = vld [vmem:[%s556_s6] ss:$0 sm:$0xff] }
  0x1a   :  { %p421_p11 = por %p420_p10, %p419_p9 }
  0x1b   :  { %344 = vmatpush3.msk.msra.mxu0 %vm56_vm1, %v44_v8 }
  0x1c   :  { %346 = vmatmul.mubr.msk.f32.vlgmr.msra.gmra.mrb[0].mxu0 %vm52_vm2, %v41_v9  ;;  %379 = vmatprep.subr.bf16.mxu0 %v443_v0  ;;  %p422_p12 = pnand %p421_p11, %p415_p8 }
  0x1d   :  { %367 = vmatprep.mubr.msk.f32.mxu0 %vm444_vm0, %v445_v1  ;;  %378 = vmatpush3.bf16.msra.mxu1 %v377_v12 }
  0x1e   :  { %381 = vmatpush3.bf16.msra.mxu0 %v380_v15 }
  0x1f   :  { %382 = vmatprep.subr.bf16.mxu0 %v443_v0 }
  0x22   :  { %384 = vmatpush3.bf16.msra.mxu0 %v383_v23 }
  0xef   :  { %v126_v17 = vpop.f32.mrb[0].mxu0 }
  0xf0   :  { %v127_v18 = vadd.f32 %v318_v16, %v126_v17  ;;  %v347_v19 = vpop.f32.mrb[1].mxu0 }
  0xf2   :  { %v130_v20 = vmax.f32 %v127_v18, 0.0 }
  0xf4   :  { %357 = vmatmul.mubr.msk.f32.vlgmr.msra.gmra.mrb[0].mxu1 %vm142_vm3, %v130_v20 }
 0x1c7   :  { %v212_v25 = vpop.f32.mrb[0].mxu1 }
 0x1c8   :  { %v213_v26 = vadd.f32 %v321_v24, %v212_v25  ;;  %v358_v27 = vpop.f32.mrb[1].mxu1 }
 0x1ca   :  { %v216_v28 = vmax.f32 %v213_v26, 0.0 }
 0x1cc   :  { %368 = vmatmul.mubr.msk.f32.vlgmr.msra.gmra.mrb[2].mxu0 %vm142_vm3, %v216_v28 }
 0x29f   :  { %v297_v30 = vpop.f32.mrb[2].mxu0 }
 0x2a0   :  { %v298_v31 = vadd.f32 %v323_v29, %v297_v30  ;;  %v369_v32 = vpop.f32.mrb[3].mxu0 }
 0x2a2   :  { %302 = vst.msk [vmem:[#allocation5] sm:$0x3] %vm301_vm4, %v298_v31 }
 0x2a3   :  { %425 = shalt.err (!%p422_p12)
}
 0x2a4   :  { %s426_s15 = scalar_lea.hbm %s557_s7, 32 }
 0x2a5   :  { %p427_p13 = scmp.ne.s32.totalorder %s557_s7, %s426_s15  ;;  %p430_p0 = scmp.lt.u32.totalorder %s426_s15, %s557_s7 }
 0x2a7   :  { %p432_p1 = pnand %p430_p0, %p427_p13 }
 0x2a9   :  { %435 = shalt.err (!%p432_p1)
}
 0x2aa   :  { %312 = dma.vmem_to_hbm [thread:$0]  %s310_s13, 32, %s557_s7, [#allocation4]  }
 0x2ab   :  { %438 = dma.done.wait [#allocation4], 32  }
 0x2ac   :  { %439 = vsyncadd [#allocation4], 4294967264 }
 0x2ad   :  { %316 = vsyncpa [#allocation3], 1 }
 0x2ae   :  { %317 = vsyncpa [#allocation4], 1 }

</bundles_post_ra>
